<compile_context>
chip_gen: v6e
topology: v6e:2x2x1
jax: 0.10.0
libtpu: 0.0.40
codegen_flags: <defaults>
</compile_context>

<pallas_src>
import functools

import jax
import jax.numpy as jnp
from jax import lax
from jax.experimental import pallas as pl
from jax.experimental.pallas import tpu as pltpu

GAMMA = 1.5
ALPHA = 0.25
LANES = 128
CHUNK_ROWS = 64          # 64 x 128 x 4B = 32 KiB per f32 temporary (8 vregs)
MAX_TILE_ROWS = 8192     # 8192 x 128 x 4B = 4 MiB per f32 input block
TARGET_BLOCKS = 4        # keep >= 4 grid blocks when possible (v7x dual-TC)
VMEM_LIMIT_BYTES = 48 * 1024 * 1024  # safe on v5e/v6e (128 MiB) and v7x (64 MiB)


def _round_up(x, m):
    return ((x + m - 1) // m) * m


def _pick_tile_rows(rows, max_tile_rows, target_blocks):
    """Tile rows: multiple of CHUNK_ROWS, aiming for >= target_blocks blocks."""
    max_tile_rows = max(CHUNK_ROWS, max_tile_rows - (max_tile_rows % CHUNK_ROWS))
    tile = _round_up(max(1, -(-rows // target_blocks)), CHUNK_ROWS)
    return max(CHUNK_ROWS, min(tile, max_tile_rows))


def _qfocal_partial_kernel(pred_ref, true_ref, out_ref, *, alpha, tile_rows,
                           chunk_rows, total_valid):
    block = pl.program_id(0)
    base_row = block * tile_rows
    n_chunks = tile_rows // chunk_rows

    # Loop-invariant flat-index iota for the tail mask (hoisted: JAX does not
    # CSE broadcast_in_dim, so do not rebuild it per chunk).
    chunk_flat_iota = (
        lax.broadcasted_iota(jnp.int32, (chunk_rows, LANES), 0) * LANES
        + lax.broadcasted_iota(jnp.int32, (chunk_rows, LANES), 1))

    def chunk_sum(c, acc):
        start = pl.multiple_of(c * chunk_rows, chunk_rows)
        x = pred_ref[pl.ds(start, chunk_rows), :].astype(jnp.float32)  # logits
        z = true_ref[pl.ds(start, chunk_rows), :].astype(jnp.float32)  # targets

        # BCEWithLogits (reduction='none'), numerically stable form:
        #   max(x, 0) - x*z + log1p(exp(-|x|))
        e = jnp.exp(-jnp.abs(x))                  # exp(-|x|), reused for sigmoid
        bce = jnp.maximum(x, 0.0) - x * z + jnp.log1p(e)

        # sigmoid(x) without a second exp: 1/(1+e) if x>=0 else e/(1+e).
        r = pl.reciprocal(1.0 + e, approx=True)
        pred_prob = jnp.where(x >= 0.0, r, e * r)

        alpha_factor = z * alpha + (1.0 - z) * (1.0 - alpha)
        m = jnp.abs(z - pred_prob)
        # gamma = 1.5 => m ** 1.5 computed exactly as m * sqrt(m).
        loss = bce * alpha_factor * (m * jnp.sqrt(m))

        # Zero-padded tail must contribute exactly 0 to the sum.
        flat_ids = chunk_flat_iota + (base_row + start) * LANES
        loss = jnp.where(flat_ids < total_valid, loss, 0.0)

        # Sublane-group VPU adds into a vreg-shaped (8,128) accumulator;
        # cross-lane reduce deferred to the wrapper.
        return acc + loss.reshape(chunk_rows // 8, 8, LANES).sum(axis=0)

    acc = lax.fori_loop(0, n_chunks, chunk_sum,
                        jnp.zeros((8, LANES), jnp.float32),
                        unroll=min(8, n_chunks))
    out_ref[...] = acc.reshape(1, 8, LANES)


def qfocal_loss(pred, true, gamma=GAMMA, alpha=ALPHA, reduction="mean",
                max_tile_rows=MAX_TILE_ROWS, target_blocks=TARGET_BLOCKS):
    """QFocalLoss(nn.BCEWithLogitsLoss()) forward: scalar mean/sum loss."""
    assert gamma == 1.5, "kernel specializes gamma=1.5 (m * sqrt(m))"
    assert pred.shape == true.shape
    if reduction not in ("mean", "sum"):
        # TODO(synk): reduction='none' would need a second elementwise kernel
        # writing the per-element loss; only 'mean'/'sum' are implemented.
        raise NotImplementedError("reduction must be 'mean' or 'sum'")

    total = pred.size
    rows = -(-total // LANES)

    tile_rows = _pick_tile_rows(rows, max_tile_rows, target_blocks)
    padded_rows = _round_up(max(rows, tile_rows), tile_rows)
    num_blocks = padded_rows // tile_rows

    pred_flat = pred.reshape(-1)
    true_flat = true.reshape(-1)
    pad = padded_rows * LANES - total
    if pad:
        pred_flat = jnp.pad(pred_flat, (0, pad))
        true_flat = jnp.pad(true_flat, (0, pad))
    pred2d = pred_flat.reshape(padded_rows, LANES)
    true2d = true_flat.reshape(padded_rows, LANES)

    kernel = functools.partial(
        _qfocal_partial_kernel, alpha=float(alpha), tile_rows=tile_rows,
        chunk_rows=CHUNK_ROWS, total_valid=total)

    padded_total = padded_rows * LANES
    bytes_in = (pred2d.size * pred2d.dtype.itemsize
                + true2d.size * true2d.dtype.itemsize)
    bytes_out = num_blocks * 8 * LANES * 4
    cost = pl.CostEstimate(flops=25 * padded_total,
                           transcendentals=3 * padded_total,
                           bytes_accessed=bytes_in + bytes_out)

    partials = pl.pallas_call(
        kernel,
        out_shape=jax.ShapeDtypeStruct((num_blocks, 8, LANES), jnp.float32),
        grid_spec=pl.GridSpec(
            grid=(num_blocks,),
            in_specs=[
                pl.BlockSpec((tile_rows, LANES), lambda i: (i, 0)),
                pl.BlockSpec((tile_rows, LANES), lambda i: (i, 0)),
            ],
            out_specs=pl.BlockSpec((1, 8, LANES), lambda i: (i, 0, 0)),
        ),
        compiler_params=pltpu.CompilerParams(
            # Independent per-block partial sums -> shard across both v7x
            # TensorCores; no-op on v5e/v6e.
            dimension_semantics=("parallel",),
            vmem_limit_bytes=VMEM_LIMIT_BYTES,
        ),
        cost_estimate=cost,
    )(pred2d, true2d)

    s = jnp.sum(partials)
    if reduction == "sum":
        return s
    return s / jnp.float32(total)


def qfocal_loss_ref(pred, true, gamma=GAMMA, alpha=ALPHA):
    x = pred.astype(jnp.float32)
    z = true.astype(jnp.float32)
    bce = jnp.maximum(x, 0.0) - x * z + jnp.log1p(jnp.exp(-jnp.abs(x)))
    p = jax.nn.sigmoid(x)
    af = z * alpha + (1.0 - z) * (1.0 - alpha)
    mf = jnp.abs(z - p) ** gamma
    return jnp.mean(bce * af * mf)


if __name__ == "__main__":
    key = jax.random.PRNGKey(0)
    k1, k2, k3, k4, k5, k6 = jax.random.split(key, 6)

    # Small NCHW shape consistent with a detection-head BCE target.
    x_shape = (2, 4, 16, 16)
    pred = jax.random.normal(k1, x_shape, dtype=jnp.float32) * 2.0   # logits
    true = (jax.random.uniform(k2, x_shape) > 0.8).astype(jnp.float32)
    out = jax.block_until_ready(qfocal_loss(pred, true))
    ref = qfocal_loss_ref(pred, true)
    # rtol relaxed: sigmoid uses the approx EUP reciprocal (~2^-12 rel error),
    # which is fine for a loss value.
    assert jnp.allclose(out, ref, rtol=1e-3, atol=1e-6), (out, ref)

    # Non-128-aligned element count -> exercises padding + in-kernel masking.
    x_shape2 = (3, 3, 20, 20)   # 3600 elements
    pred2 = jax.random.normal(k3, x_shape2, dtype=jnp.float32) * 2.0
    true2 = (jax.random.uniform(k4, x_shape2) > 0.8).astype(jnp.float32)
    out2 = jax.block_until_ready(qfocal_loss(pred2, true2))
    ref2 = qfocal_loss_ref(pred2, true2)
    assert jnp.allclose(out2, ref2, rtol=1e-3, atol=1e-6), (out2, ref2)

    # Multi-block "parallel" grid (small tile cap forces 4 blocks).
    x_shape3 = (2, 4, 64, 64)   # 32768 elements -> 256 rows -> 4 blocks of 64
    pred3 = jax.random.normal(k5, x_shape3, dtype=jnp.float32) * 2.0
    true3 = (jax.random.uniform(k6, x_shape3) > 0.8).astype(jnp.float32)
    out3 = jax.block_until_ready(qfocal_loss(pred3, true3, max_tile_rows=64))
    ref3 = qfocal_loss_ref(pred3, true3)
    assert jnp.allclose(out3, ref3, rtol=1e-3, atol=1e-6), (out3, ref3)

    print("KERNEL_OK")
</pallas_src>

<mosaic_0001>
module attributes {stable_mosaic.version = 11 : i64} {
  func.func @_qfocal_partial_kernel(%arg0: i32, %arg1: memref<64x128xf32, #tpu.memory_space<vmem>>, %arg2: memref<64x128xf32, #tpu.memory_space<vmem>>, %arg3: memref<1x8x128xf32, #tpu.memory_space<vmem>>) attributes {dimension_semantics = [#tpu.dimension_semantics<parallel>], iteration_bounds = array<i64: 1>, scalar_prefetch = 0 : i64, scratch_operands = 0 : i64, tpu.core_type = #tpu.core_type<tc>, window_params = [{transform_indices = @transform_0, window_bounds = array<i64: 64, 128>}, {transform_indices = @transform_1, window_bounds = array<i64: 64, 128>}, {transform_indices = @transform_2, window_bounds = array<i64: 1, 8, 128>}]} {
    %c64_i32 = arith.constant 64 : i32
    %0 = arith.muli %arg0, %c64_i32 : i32
    %1 = tpu.iota {dimensions = array<i32: 0>} : vector<64x128xi32>
    %c128_i32 = arith.constant 128 : i32
    %2 = vector.broadcast %c128_i32 : i32 to vector<64x128xi32>
    %3 = arith.muli %1, %2 : vector<64x128xi32>
    %4 = tpu.iota {dimensions = array<i32: 1>} : vector<64x128xi32>
    %5 = arith.addi %3, %4 : vector<64x128xi32>
    %cst = arith.constant 0.000000e+00 : f32
    %6 = vector.broadcast %cst : f32 to vector<8x128xf32>
    %c0_i32 = arith.constant 0 : i32
    %c64_i32_0 = arith.constant 64 : i32
    %7 = arith.muli %c0_i32, %c64_i32_0 : i32
    %8 = tpu.assume_multiple %7, 64 : i32
    %9 = arith.index_cast %8 : i32 to index
    %c0 = arith.constant 0 : index
    %10 = vector.load %arg1[%9, %c0] : memref<64x128xf32, #tpu.memory_space<vmem>>, vector<64x128xf32>
    %11 = arith.index_cast %8 : i32 to index
    %c0_1 = arith.constant 0 : index
    %12 = vector.load %arg2[%11, %c0_1] : memref<64x128xf32, #tpu.memory_space<vmem>>, vector<64x128xf32>
    %13 = math.absf %10 : vector<64x128xf32>
    %cst_2 = arith.constant 0.000000e+00 : f32
    %14 = vector.broadcast %cst_2 : f32 to vector<64x128xf32>
    %15 = arith.subf %14, %13 : vector<64x128xf32>
    %16 = math.exp %15 : vector<64x128xf32>
    %cst_3 = arith.constant 0.000000e+00 : f32
    %17 = vector.broadcast %cst_3 : f32 to vector<64x128xf32>
    %18 = arith.maximumf %10, %17 : vector<64x128xf32>
    %19 = arith.mulf %10, %12 : vector<64x128xf32>
    %20 = arith.subf %18, %19 : vector<64x128xf32>
    %21 = math.log1p %16 : vector<64x128xf32>
    %22 = arith.addf %20, %21 : vector<64x128xf32>
    %cst_4 = arith.constant 1.000000e+00 : f32
    %23 = vector.broadcast %cst_4 : f32 to vector<64x128xf32>
    %24 = arith.addf %23, %16 : vector<64x128xf32>
    %25 = tpu.reciprocal %24 {approx = true} : vector<64x128xf32> -> vector<64x128xf32>
    %cst_5 = arith.constant 0.000000e+00 : f32
    %26 = vector.broadcast %cst_5 : f32 to vector<64x128xf32>
    %27 = arith.cmpf oge, %10, %26 : vector<64x128xf32>
    %28 = arith.mulf %16, %25 : vector<64x128xf32>
    %29 = arith.select %27, %25, %28 : vector<64x128xi1>, vector<64x128xf32>
    %cst_6 = arith.constant 2.500000e-01 : f32
    %30 = vector.broadcast %cst_6 : f32 to vector<64x128xf32>
    %31 = arith.mulf %12, %30 : vector<64x128xf32>
    %cst_7 = arith.constant 1.000000e+00 : f32
    %32 = vector.broadcast %cst_7 : f32 to vector<64x128xf32>
    %33 = arith.subf %32, %12 : vector<64x128xf32>
    %cst_8 = arith.constant 7.500000e-01 : f32
    %34 = vector.broadcast %cst_8 : f32 to vector<64x128xf32>
    %35 = arith.mulf %33, %34 : vector<64x128xf32>
    %36 = arith.addf %31, %35 : vector<64x128xf32>
    %37 = arith.subf %12, %29 : vector<64x128xf32>
    %38 = math.absf %37 : vector<64x128xf32>
    %39 = arith.mulf %22, %36 : vector<64x128xf32>
    %40 = math.sqrt %38 : vector<64x128xf32>
    %41 = arith.mulf %38, %40 : vector<64x128xf32>
    %42 = arith.mulf %39, %41 : vector<64x128xf32>
    %43 = arith.addi %0, %8 : i32
    %c128_i32_9 = arith.constant 128 : i32
    %44 = arith.muli %43, %c128_i32_9 : i32
    %45 = vector.broadcast %44 : i32 to vector<64x128xi32>
    %46 = arith.addi %5, %45 : vector<64x128xi32>
    %c2048_i32 = arith.constant 2048 : i32
    %47 = vector.broadcast %c2048_i32 : i32 to vector<64x128xi32>
    %48 = arith.cmpi slt, %46, %47 : vector<64x128xi32>
    %cst_10 = arith.constant 0.000000e+00 : f32
    %49 = vector.broadcast %cst_10 : f32 to vector<64x128xf32>
    %50 = arith.select %48, %42, %49 : vector<64x128xi1>, vector<64x128xf32>
    %51 = vector.shape_cast %50 : vector<64x128xf32> to vector<8x8x128xf32>
    %cst_11 = arith.constant dense<0.000000e+00> : vector<8x128xf32>
    %52 = vector.multi_reduction <add>, %51, %cst_11 [0] : vector<8x8x128xf32> to vector<8x128xf32>
    %53 = arith.addf %6, %52 : vector<8x128xf32>
    %c1_i32 = arith.constant 1 : i32
    %54 = vector.shape_cast %53 : vector<8x128xf32> to vector<1x8x128xf32>
    %c0_12 = arith.constant 0 : index
    %c0_13 = arith.constant 0 : index
    %c0_14 = arith.constant 0 : index
    %55 = vector.load %arg3[%c0_12, %c0_13, %c0_14] : memref<1x8x128xf32, #tpu.memory_space<vmem>>, vector<1x8x128xf32>
    tpu.vector_store %arg3[%c0_12, %c0_13, %c0_14], %54 {strides = array<i32>} : memref<1x8x128xf32, #tpu.memory_space<vmem>>, vector<1x8x128xf32>,
    return
  }
  func.func @transform_0(%arg0: i32) -> (i32, i32) {
    %c0_i32 = arith.constant 0 : i32
    %c0_i32_0 = arith.constant 0 : i32
    return %arg0, %c0_i32 : i32, i32
  }
  func.func @transform_1(%arg0: i32) -> (i32, i32) {
    %c0_i32 = arith.constant 0 : i32
    %c0_i32_0 = arith.constant 0 : i32
    return %arg0, %c0_i32 : i32, i32
  }
  func.func @transform_2(%arg0: i32) -> (i32, i32, i32) {
    %c0_i32 = arith.constant 0 : i32
    %c0_i32_0 = arith.constant 0 : i32
    %c0_i32_1 = arith.constant 0 : i32
    return %arg0, %c0_i32, %c0_i32_0 : i32, i32, i32
  }
}

</mosaic_0001>

<bundles_post_ra>
// kernel: tpu_custom_call.1
= control target key start
LH: loop header
LB: loop body
LE: loop exit
PB: predicated region body
PF: predicated region fallthrough
CT: control target
= control target key end

     0   :  { %7 = vsyncpa [#allocation3], 0  ;;  %s1114_s0 = inlined_call_operand.hbm [shape: f32[64,128], index: 0, kind: input, shape index: {}]   ;;  %s1115_s1 = inlined_call_operand.hbm [shape: f32[64,128], index: 1, kind: input, shape index: {}]   ;;  %s1116_s2 = inlined_call_operand.hbm [shape: f32[1,8,128], index: 2, kind: output, shape index: {}]  }
   0x1   :  { %8 = vsyncpa [#allocation6], 0 }
   0x2   :  { %9 = vsyncpa [#allocation4], 0  ;;  %s575_s9 = smov [#allocation2]  }
   0x3   :  { %s15_s10 = sshll.u32 %s575_s9, 4  ;;  %s16_s10 = int_to_ptr.vmem [resolvable:$true] %s15_s10 }
   0x4   :  { %s517_s11 = scalar_lea.vmem %s16_s10, 1024  ;;  %p522_p1 = scmp.lt.s32.totalorder %s16_s10, %s16_s10 }
   0x5   :  { %p518_p0 = scmp.ne.s32.totalorder %s16_s10, %s517_s11  ;;  %p523_p2 = scmp.lt.s32.totalorder %s517_s11, %s517_s11 }
   0x7   :  { %p524_p3 = por %p523_p2, %p522_p1 }
   0x9   :  { %p525_p4 = pnand %p524_p3, %p518_p0 }
   0xb   :  { %528 = shalt.err (!%p525_p4)
}
   0xc   :  { %s576_s12 = smov 128   ;;  %s577_s13 = smov 8  }
   0xd   :  { %21 = dma.hbm_to_vmem [thread:$0]  %s1114_s0, 1024, %s16_s10, [#allocation3], %s576_s12, %s576_s12, %s577_s13  }
   0xe   :  { %s578_s16 = smov [#allocation5]  }
   0xf   :  { %s27_s17 = sshll.u32 %s578_s16, 4  ;;  %s28_s17 = int_to_ptr.vmem [resolvable:$true] %s27_s17 }
  0x10   :  { %s537_s18 = scalar_lea.vmem %s28_s17, 1024  ;;  %p542_p6 = scmp.lt.s32.totalorder %s28_s17, %s28_s17 }
  0x11   :  { %p538_p5 = scmp.ne.s32.totalorder %s28_s17, %s537_s18  ;;  %p543_p7 = scmp.lt.s32.totalorder %s537_s18, %s537_s18 }
  0x13   :  { %p544_p8 = por %p543_p7, %p542_p6 }
  0x15   :  { %p545_p9 = pnand %p544_p8, %p538_p5 }
  0x17   :  { %548 = shalt.err (!%p545_p9)
}
  0x18   :  { %33 = dma.hbm_to_vmem [thread:$0]  %s1115_s1, 1024, %s28_s17, [#allocation6], %s576_s12, %s576_s12, %s577_s13  }
  0x19   :  { %569 = dma.done.wait [#allocation3], 1024  }
  0x1a   :  { %570 = vsyncadd [#allocation3], 4294966272 }
  0x1b   :  { %571 = dma.done.wait [#allocation6], 1024  }
  0x1c   :  { %572 = vsyncadd [#allocation6], 4294966272  ;;  %v601_v0 = vld [vmem:[#allocation2] sm:$0xff]  ;;  %v603_v1 = vld [vmem:[#allocation2 + $0x8] sm:$0xff]  ;;  %v41_v11 = vlaneseq  ;;  %s579_s0 = smov [#allocation7]  }
  0x1d   :  { %v605_v2 = vld [vmem:[#allocation2 + $0x10] sm:$0xff]  ;;  %v607_v3 = vld [vmem:[#allocation2 + $0x18] sm:$0xff]  ;;  %v84_v4 = vand.u32 2147483647, %v601_v0  ;;  %v610_v5 = vld [vmem:[#allocation2 + $0x20] sm:$0xff]  ;;  %v116_v54 = vmax.f32 %v601_v0, 0.0 }
  0x1e   :  { %v85_v6 = vand.u32 2147483647, %v603_v1  ;;  %v86_v7 = vand.u32 2147483647, %v605_v2  ;;  %v87_v8 = vand.u32 2147483647, %v607_v3 }
  0x1f   :  { %v88_v9 = vand.u32 2147483647, %v610_v5  ;;  %v92_v10 = vsub.f32 0.0, %v84_v4  ;;  %v616_v12 = vld [vmem:[#allocation2 + $0x28] sm:$0xff]  ;;  %v618_v14 = vld [vmem:[#allocation2 + $0x30] sm:$0xff]  ;;  %v620_v16 = vld [vmem:[#allocation2 + $0x38] sm:$0xff] }
  0x20   :  { %v93_v13 = vsub.f32 0.0, %v85_v6  ;;  %v94_v15 = vsub.f32 0.0, %v86_v7  ;;  %v95_v17 = vsub.f32 0.0, %v87_v8  ;;  %v89_v18 = vand.u32 2147483647, %v616_v12  ;;  %v638_v51 = vld [vmem:[#allocation5] sm:$0xff] }
  0x21   :  { %v96_v19 = vsub.f32 0.0, %v88_v9  ;;  %v100_v20 = vmul.f32 1.442695, %v92_v10  ;;  %v42_v21 = vshrl.u32 %v41_v11, 7  ;;  %v90_v22 = vand.u32 2147483647, %v618_v14 }
  0x22   :  { %v102_v23 = vmul.f32 1.442695, %v93_v13  ;;  %v91_v24 = vand.u32 2147483647, %v620_v16  ;;  %v104_v25 = vmul.f32 1.442695, %v94_v15  ;;  %v124_v56 = vmul.f32 %v638_v51, %v601_v0 }
  0x23   :  { %v106_v26 = vmul.f32 1.442695, %v95_v17  ;;  %v97_v27 = vsub.f32 0.0, %v89_v18  ;;  %445 = vpow2.f32 %v100_v20  ;;  %v108_v28 = vmul.f32 1.442695, %v96_v19  ;;  %v640_v52 = vld [vmem:[#allocation5 + $0x8] sm:$0xff] }
  0x24   :  { %v43_v29 = vadd.s32 8, %v42_v21  ;;  %v98_v30 = vsub.f32 0.0, %v90_v22  ;;  %447 = vpow2.f32 %v102_v23  ;;  %v625_v31 = vand.u32 127, %v41_v11  ;;  %v642_v53 = vld [vmem:[#allocation5 + $0x10] sm:$0xff]  ;;  %v645_v55 = vld [vmem:[#allocation5 + $0x18] sm:$0xff]  ;;  %v653_v59 = vld [vmem:[#allocation5 + $0x20] sm:$0xff] }
  0x25   :  { %v99_v32 = vsub.f32 0.0, %v91_v24  ;;  %449 = vpow2.f32 %v104_v25  ;;  %v44_v33 = vadd.s32 16, %v42_v21  ;;  %v45_v34 = vadd.s32 24, %v42_v21  ;;  %v655_v60 = vld [vmem:[#allocation5 + $0x28] sm:$0xff]  ;;  %v661_v6 = vld [vmem:[#allocation5 + $0x30] sm:$0xff]  ;;  %v663_v7 = vld [vmem:[#allocation5 + $0x38] sm:$0xff] }
  0x26   :  { %1124 = vst [vmem:[#allocation11_spill] sm:$0xff] %v625_v31  ;;  %v46_v35 = vadd.s32 32, %v42_v21  ;;  %451 = vpow2.f32 %v106_v26  ;;  %v47_v36 = vadd.s32 40, %v42_v21  ;;  %v50_v37 = vmul.u32 128, %v42_v21  ;;  %s430_s1 = sshll.u32 %s579_s0, 4  ;;  %s431_s1 = int_to_ptr.vmem [resolvable:$true] %s430_s1 }
  0x27   :  { %453 = vpow2.f32 %v108_v28  ;;  %v110_v38 = vmul.f32 1.442695, %v97_v27  ;;  %v627_v39 = vadd.s32 48, %v42_v21  ;;  %v51_v40 = vmul.u32 128, %v43_v29  ;;  %s549_s21 = scalar_lea.vmem %s431_s1, 128  ;;  %p554_p11 = scmp.lt.s32.totalorder %s431_s1, %s431_s1 }
  0x28   :  { %v112_v41 = vmul.f32 1.442695, %v98_v30  ;;  %v114_v42 = vmul.f32 1.442695, %v99_v32  ;;  %v629_v43 = vadd.s32 56, %v42_v21  ;;  %v52_v44 = vmul.u32 128, %v44_v33  ;;  %p550_p10 = scmp.ne.s32.totalorder %s431_s1, %s549_s21  ;;  %p555_p12 = scmp.lt.s32.totalorder %s549_s21, %s549_s21 }
  0x29   :  { %1125 = vst [vmem:[#allocation12_spill] sm:$0xff] %v627_v39  ;;  %v53_v45 = vmul.u32 128, %v45_v34  ;;  %v54_v46 = vmul.u32 128, %v46_v35  ;;  %v632_v48 = vadd.s32 %v625_v31, %v50_v37  ;;  %455 = vpow2.f32 %v110_v38 }
  0x2a   :  { %1126 = vst [vmem:[#allocation13_spill] sm:$0xff] %v629_v43  ;;  %v55_v47 = vmul.u32 128, %v47_v36  ;;  %v636_v50 = vadd.s32 %v625_v31, %v51_v40  ;;  %457 = vpow2.f32 %v112_v41  ;;  %v125_v57 = vmul.f32 %v640_v52, %v603_v1  ;;  %p556_p13 = por %p555_p12, %p554_p11 }
  0x2b   :  { %1127 = vst [vmem:[#allocation14_spill] sm:$0xff] %v632_v48  ;;  %459 = vpow2.f32 %v114_v42  ;;  %v126_v58 = vmul.f32 %v642_v53, %v605_v2  ;;  %v117_v61 = vmax.f32 %v603_v1, 0.0  ;;  %v118_v62 = vmax.f32 %v605_v2, 0.0 }
  0x2c   :  { %1128 = vst [vmem:[#allocation15_spill] sm:$0xff] %v636_v50  ;;  %v119_v63 = vmax.f32 %v607_v3, 0.0  ;;  %v120_v4 = vmax.f32 %v610_v5, 0.0  ;;  %v121_v8 = vmax.f32 %v616_v12, 0.0  ;;  %v127_v9 = vmul.f32 %v645_v55, %v607_v3  ;;  %p557_p0 = pnand %p556_p13, %p550_p10 }
  0x2d   :  { %v128_v10 = vmul.f32 %v653_v59, %v610_v5  ;;  %v129_v11 = vmul.f32 %v655_v60, %v616_v12  ;;  %v122_v15 = vmax.f32 %v618_v14, 0.0  ;;  %v123_v17 = vmax.f32 %v620_v16, 0.0 }
  0x2e   :  { %v130_v18 = vmul.f32 %v661_v6, %v618_v14  ;;  %v131_v19 = vmul.f32 %v663_v7, %v620_v16  ;;  %v684_v22 = vadd.s32 %v625_v31, %v52_v44  ;;  %v687_v23 = vadd.s32 %v625_v31, %v53_v45 }
  0x2f   :  { %v690_v24 = vadd.s32 %v625_v31, %v54_v46  ;;  %v695_v26 = vadd.s32 %v625_v31, %v55_v47  ;;  %v697_v27 = vsub.f32 %v116_v54, %v124_v56  ;;  %v699_v28 = vsub.f32 %v117_v61, %v125_v57 }
  0x30   :  { %v672_v13 = vpop.eup %445  ;;  %1129 = vst [vmem:[#allocation16_spill] sm:$0xff] %v684_v22  ;;  %1130 = vst [vmem:[#allocation17_spill] sm:$0xff] %v687_v23  ;;  %v701_v29 = vsub.f32 %v118_v62, %v126_v58  ;;  %v705_v32 = vsub.f32 %v119_v63, %v127_v9  ;;  %v707_v33 = vsub.f32 %v120_v4, %v128_v10  ;;  %v720_v41 = vmul.f32 0.25, %v638_v51 }
  0x31   :  { %v680_v20 = vpop.eup %447  ;;  %1131 = vst [vmem:[#allocation18_spill] sm:$0xff] %v690_v24  ;;  %1132 = vst [vmem:[#allocation19_spill] sm:$0xff] %v695_v26  ;;  %v709_v34 = vsub.f32 %v121_v8, %v129_v11  ;;  %v140_v35 = vadd.f32 1.0, %v672_v13  ;;  %v714_v37 = vsub.f32 %v122_v15, %v130_v18  ;;  %v716_v38 = vsub.f32 %v123_v17, %v131_v19 }
  0x32   :  { %v692_v25 = vpop.eup %449  ;;  %1133 = vst [vmem:[#allocation20_spill] sm:$0xff] %v707_v33  ;;  %v149_v40 = vadd.f32 1.0, %v680_v20  ;;  %v724_v44 = vmul.f32 0.25, %v640_v52  ;;  %v727_v45 = vmul.f32 0.25, %v642_v53  ;;  %v731_v47 = vmul.f32 0.25, %v645_v55 }
  0x33   :  { %v703_v30 = vpop.eup %451  ;;  %1134 = vst [vmem:[#allocation21_spill] sm:$0xff] %v709_v34  ;;  %1135 = vst [vmem:[#allocation22_spill] sm:$0xff] %v714_v37  ;;  %461 = vlog2.f32 %v140_v35  ;;  %v158_v42 = vadd.f32 1.0, %v692_v25  ;;  %v734_v54 = vmul.f32 0.25, %v653_v59  ;;  %v738_v57 = vmul.f32 0.25, %v655_v60 }
  0x34   :  { %v712_v36 = vpop.eup %453  ;;  %1136 = vst [vmem:[#allocation23_spill] sm:$0xff] %v716_v38  ;;  %1137 = vst [vmem:[#allocation24_spill] sm:$0xff] %v727_v45  ;;  %463 = vlog2.f32 %v149_v40  ;;  %v167_v46 = vadd.f32 1.0, %v703_v30  ;;  %v741_v58 = vmul.f32 0.25, %v661_v6  ;;  %v746_v62 = vmul.f32 0.25, %v663_v7 }
  0x35   :  { %1138 = vst [vmem:[#allocation25_spill] sm:$0xff] %v731_v47  ;;  %1139 = vst [vmem:[#allocation26_spill] sm:$0xff] %v734_v54  ;;  %465 = vlog2.f32 %v158_v42  ;;  %v176_v56 = vadd.f32 1.0, %v712_v36  ;;  %v143_v17 = vmul.f32 -0.5, %v672_v13  ;;  %v152_v18 = vmul.f32 -0.5, %v680_v20 }
  0x36   :  { %1140 = vst [vmem:[#allocation27_spill] sm:$0xff] %v738_v57  ;;  %1141 = vst [vmem:[#allocation28_spill] sm:$0xff] %v741_v58  ;;  %v743_v61 = vpop.eup %455  ;;  %467 = vlog2.f32 %v167_v46  ;;  %v146_v21 = vand.u32 2147483647, %v672_v13  ;;  %v161_v49 = vmul.f32 -0.5, %v692_v25  ;;  %v170_v11 = vmul.f32 -0.5, %v703_v30 }
  0x37   :  { %1142 = vst [vmem:[#allocation29_spill] sm:$0xff] %v746_v62  ;;  %v750_v8 = vpop.eup %457  ;;  %469 = vlog2.f32 %v176_v56  ;;  %v185_v4 = vadd.f32 1.0, %v743_v61  ;;  %v155_v10 = vand.u32 2147483647, %v680_v20  ;;  %v179_v63 = vmul.f32 -0.5, %v712_v36 }
  0x38   :  { %v755_v15 = vpop.eup %459  ;;  %471 = vrcp.f32 %v140_v35  ;;  %v194_v9 = vadd.f32 1.0, %v750_v8  ;;  %v188_v35 = vmul.f32 -0.5, %v743_v61  ;;  %v144_v26 = vadd.f32 1.0, %v143_v17 }
  0x39   :  { %473 = vrcp.f32 %v149_v40  ;;  %v203_v19 = vadd.f32 1.0, %v755_v15  ;;  %v153_v43 = vadd.f32 1.0, %v152_v18  ;;  %v274_v24 = vsub.f32 1.0, %v661_v6 }
  0x3a   :  { %475 = vrcp.f32 %v158_v42  ;;  %v162_v40 = vadd.f32 1.0, %v161_v49  ;;  %v197_v31 = vmul.f32 -0.5, %v750_v8  ;;  %vm236_vm0 = vcmp.ge.f32.partialorder %v601_v0, 0.0 }
  0x3b   :  { %477 = vrcp.f32 %v167_v46  ;;  %v275_v42 = vsub.f32 1.0, %v663_v7  ;;  %vm773_vm1 = vcmp.lt.f32.partialorder %v146_v21, 0.0004427343  ;;  %v171_v23 = vadd.f32 1.0, %v170_v11 }
  0x3c   :  { %479 = vrcp.f32 %v176_v56  ;;  %v206_v46 = vmul.f32 -0.5, %v755_v15  ;;  %vm237_vm2 = vcmp.ge.f32.partialorder %v603_v1, 0.0  ;;  %vm779_vm3 = vcmp.lt.f32.partialorder %v155_v10, 0.0004427343 }
  0x3d   :  { %481 = vrcp.f32 %v185_v4  ;;  %v180_v49 = vadd.f32 1.0, %v179_v63  ;;  %v189_v17 = vadd.f32 1.0, %v188_v35  ;;  %vm238_vm4 = vcmp.ge.f32.partialorder %v605_v2, 0.0 }
  0x3e   :  { %483 = vrcp.f32 %v194_v9  ;;  %v785_v21 = vmul.f32 %v672_v13, %v144_v26  ;;  %v788_v11 = vmul.f32 %v680_v20, %v153_v43  ;;  %v164_v38 = vand.u32 2147483647, %v692_v25 }
  0x3f   :  { %485 = vrcp.f32 %v203_v19  ;;  %v173_v22 = vand.u32 2147483647, %v703_v30  ;;  %vm239_vm5 = vcmp.ge.f32.partialorder %v607_v3, 0.0  ;;  %v794_v63 = vmul.f32 %v692_v25, %v162_v40 }
  0x40   :  { %v462_v18 = vpop.eup %461  ;;  %v182_v35 = vand.u32 2147483647, %v712_v36  ;;  %487 = vlog2.f32 %v185_v4  ;;  %v198_v50 = vadd.f32 1.0, %v197_v31  ;;  %vm240_vm6 = vcmp.ge.f32.partialorder %v610_v5, 0.0 }
  0x41   :  { %v464_v10 = vpop.eup %463  ;;  %v799_v43 = vmul.f32 %v703_v30, %v171_v23  ;;  %v191_v48 = vand.u32 2147483647, %v743_v61  ;;  %489 = vlog2.f32 %v194_v9  ;;  %v207_v37 = vadd.f32 1.0, %v206_v46 }
  0x42   :  { %v466_v26 = vpop.eup %465  ;;  %vm241_vm7 = vcmp.ge.f32.partialorder %v616_v12, 0.0  ;;  %v803_v62 = vmul.f32 0.6931472, %v462_v18  ;;  %v806_v40 = vmul.f32 %v712_v36, %v180_v49  ;;  %v809_v31 = vmul.f32 %v743_v61, %v189_v17 }
  0x43   :  { %v468_v34 = vpop.eup %467  ;;  %v200_v4 = vand.u32 2147483647, %v750_v8  ;;  %vm242_vm8 = vcmp.ge.f32.partialorder %v618_v14, 0.0  ;;  %491 = vlog2.f32 %v203_v19  ;;  %vm243_vm9 = vcmp.ge.f32.partialorder %v620_v16, 0.0 }
  0x44   :  { %1147 = vst [vmem:[#allocation30_spill] sm:$0xff] %v809_v31  ;;  %v470_v23 = vpop.eup %469  ;;  %v1148_v46 = vsub.f32 1.0, %v638_v51  ;;  %v1149_v58 = vsub.f32 1.0, %v640_v52  ;;  %v819_v54 = vmul.f32 0.6931472, %v464_v10  ;;  %v826_v31 = vmul.f32 %v750_v8, %v198_v50 }
  0x45   :  { %v472_v57 = vpop.eup %471  ;;  %vm821_vm10 = vcmp.lt.f32.partialorder %v164_v38, 0.0004427343  ;;  %v1153_v19 = vsub.f32 1.0, %v642_v53  ;;  %v1155_v33 = vsub.f32 1.0, %v645_v55  ;;  %vm836_vm11 = vcmp.lt.f32.partialorder %v173_v22, 0.0004427343 }
  0x46   :  { %v276_v18 = vmul.f32 0.75, %v1148_v46  ;;  %v277_v49 = vmul.f32 0.75, %v1149_v58  ;;  %1152 = vst [vmem:[#allocation31_spill] sm:$0xff] %v826_v31  ;;  %v474_v47 = vpop.eup %473  ;;  %vm840_vm12 = vcmp.lt.f32.partialorder %v182_v35, 0.0004427343  ;;  %v845_v50 = vmul.f32 %v755_v15, %v207_v37 }
  0x47   :  { %v830_v9 = vmul.f32 0.75, %v1153_v19  ;;  %v834_v46 = vmul.f32 0.75, %v1155_v33  ;;  %v244_v10 = vmul.f32 %v472_v57, %v672_v13  ;;  %v1162_v19 = vsub.f32 1.0, %v653_v59  ;;  %v476_v22 = vpop.eup %475 }
  0x48   :  { %1161 = vst [vmem:[#allocation34_spill] sm:$0xff] %v845_v50  ;;  %v1164_v33 = vsub.f32 1.0, %v655_v60  ;;  %v148_v35 = vsel %vm773_vm1, %v785_v21, %v803_v62  ;;  %v861_v37 = vmul.f32 0.75, %v274_v24  ;;  %v863_v50 = vmul.f32 0.75, %v275_v42  ;;  %v478_v13 = vpop.eup %477 }
  0x49   :  { %1154 = vst [vmem:[#allocation32_spill] sm:$0xff] %v830_v9  ;;  %1156 = vst [vmem:[#allocation33_spill] sm:$0xff] %v834_v46  ;;  %v850_v31 = vmul.f32 0.75, %v1162_v19  ;;  %v245_v9 = vmul.f32 %v474_v47, %v680_v20  ;;  %v160_v45 = vmul.f32 0.6931472, %v466_v26  ;;  %v246_v19 = vmul.f32 %v476_v22, %v692_v25 }
  0x4a   :  { %v854_v46 = vmul.f32 0.75, %v1164_v33  ;;  %v252_v33 = vsel %vm236_vm0, %v472_v57, %v244_v10  ;;  %v157_v39 = vsel %vm779_vm3, %v788_v11, %v819_v54  ;;  %v247_v20 = vmul.f32 %v478_v13, %v703_v30 }
  0x4b   :  { %1163 = vst [vmem:[#allocation35_spill] sm:$0xff] %v850_v31  ;;  %v480_v31 = vpop.eup %479  ;;  %v253_v24 = vsel %vm237_vm2, %v474_v47, %v245_v9  ;;  %v292_v62 = vsub.f32 %v638_v51, %v252_v33  ;;  %v169_v42 = vmul.f32 0.6931472, %v468_v34  ;;  %vm883_vm13 = vcmp.lt.f32.partialorder %v191_v48, 0.0004427343  ;;  %v1174_v33 = vld [vmem:[#allocation20_spill] sm:$0xff] }
  0x4c   :  { %1165 = vst [vmem:[#allocation36_spill] sm:$0xff] %v854_v46  ;;  %v869_v46 = vadd.f32 %v276_v18, %v720_v41  ;;  %v482_v25 = vpop.eup %481  ;;  %v248_v0 = vmul.f32 %v480_v31, %v712_v36  ;;  %v254_v41 = vsel %vm238_vm4, %v476_v22, %v246_v19  ;;  %v293_v57 = vsub.f32 %v640_v52, %v253_v24  ;;  %v1172_v22 = vld [vmem:[#allocation25_spill] sm:$0xff]  ;;  %v1177_v24 = vld [vmem:[#allocation30_spill] sm:$0xff] }
  0x4d   :  { %v484_v21 = vpop.eup %483  ;;  %vm887_vm14 = vcmp.lt.f32.partialorder %v200_v4, 0.0004427343  ;;  %v249_v1 = vmul.f32 %v482_v25, %v743_v61  ;;  %v255_v51 = vsel %vm239_vm5, %v478_v13, %v247_v20  ;;  %v294_v34 = vsub.f32 %v642_v53, %v254_v41  ;;  %v1182_v41 = vld [vmem:[#allocation27_spill] sm:$0xff] }
  0x4e   :  { %v895_v2 = vand.u32 2147483647, %v292_v62  ;;  %v486_v36 = vpop.eup %485  ;;  %v178_v52 = vmul.f32 0.6931472, %v470_v23  ;;  %v250_v48 = vmul.f32 %v484_v21, %v750_v8  ;;  %v256_v47 = vsel %vm240_vm6, %v480_v31, %v248_v0  ;;  %v1178_v62 = vld [vmem:[#allocation31_spill] sm:$0xff] }
  0x4f   :  { %v295_v54 = vsub.f32 %v645_v55, %v255_v51  ;;  %v251_v11 = vmul.f32 %v486_v36, %v755_v15  ;;  %v257_v61 = vsel %vm241_vm7, %v482_v25, %v249_v1  ;;  %v296_v3 = vsub.f32 %v653_v59, %v256_v47  ;;  %v488_v53 = vpop.eup %487  ;;  %v1184_v1 = vld [vmem:[#allocation28_spill] sm:$0xff]  ;;  %v1185_v51 = vld [vmem:[#allocation29_spill] sm:$0xff] }
  0x50   :  { %v905_v26 = vand.u32 2147483647, %v293_v57  ;;  %v258_v4 = vsel %vm242_vm8, %v484_v21, %v250_v48  ;;  %v297_v8 = vsub.f32 %v655_v60, %v257_v61  ;;  %v910_v23 = vand.u32 2147483647, %v294_v34  ;;  %v490_v5 = vpop.eup %489  ;;  %v1171_v58 = vld [vmem:[#allocation32_spill] sm:$0xff]  ;;  %v1186_v48 = vld [vmem:[#allocation34_spill] sm:$0xff] }
  0x51   :  { %493 = vrsqrt.f32 %v895_v2  ;;  %v212_v55 = vadd.f32 %v148_v35, %v697_v27  ;;  %v259_v12 = vsel %vm243_vm9, %v486_v36, %v251_v11  ;;  %v298_v59 = vsub.f32 %v661_v6, %v258_v4  ;;  %v492_v10 = vpop.eup %491  ;;  %v1173_v35 = vld [vmem:[#allocation33_spill] sm:$0xff] }
  0x52   :  { %v917_v31 = vand.u32 2147483647, %v295_v54  ;;  %v166_v14 = vsel %vm821_vm10, %v794_v63, %v160_v45  ;;  %v285_v60 = vadd.f32 %v277_v49, %v724_v44  ;;  %v299_v9 = vsub.f32 %v663_v7, %v259_v12  ;;  %v1187_v47 = vld [vmem:[#allocation21_spill] sm:$0xff] }
  0x53   :  { %v924_v18 = vand.u32 2147483647, %v296_v3  ;;  %v175_v16 = vsel %vm836_vm11, %v799_v43, %v169_v42  ;;  %v184_v6 = vsel %vm840_vm12, %v806_v40, %v178_v52  ;;  %v932_v27 = vand.u32 2147483647, %v297_v8  ;;  %v1170_v40 = vld [vmem:[#allocation24_spill] sm:$0xff] }
  0x54   :  { %495 = vrsqrt.f32 %v905_v26  ;;  %v187_v45 = vmul.f32 0.6931472, %v488_v53  ;;  %v196_v63 = vmul.f32 0.6931472, %v490_v5  ;;  %v935_v44 = vand.u32 2147483647, %v298_v59 }
  0x55   :  { %497 = vrsqrt.f32 %v910_v23  ;;  %v213_v7 = vadd.f32 %v157_v39, %v699_v28  ;;  %v214_v49 = vadd.f32 %v166_v14, %v701_v29  ;;  %v940_v17 = vand.u32 2147483647, %v299_v9  ;;  %v1175_v39 = vld [vmem:[#allocation26_spill] sm:$0xff]  ;;  %v1176_v29 = vld [vmem:[#allocation35_spill] sm:$0xff]  ;;  %v1183_v57 = vld [vmem:[#allocation36_spill] sm:$0xff] }
  0x56   :  { %499 = vrsqrt.f32 %v917_v31  ;;  %v215_v43 = vadd.f32 %v175_v16, %v705_v32  ;;  %v286_v38 = vadd.f32 %v1171_v58, %v1170_v40  ;;  %v287_v13 = vadd.f32 %v1173_v35, %v1172_v22  ;;  %v1190_v9 = vld [vmem:[#allocation15_spill] sm:$0xff] }
  0x57   :  { %501 = vrsqrt.f32 %v924_v18  ;;  %v949_v19 = vmul.f32 0.6931472, %v492_v10  ;;  %v216_v28 = vadd.f32 %v184_v6, %v1174_v33  ;;  %v288_v20 = vadd.f32 %v1176_v29, %v1175_v39 }
  0x58   :  { %503 = vrsqrt.f32 %v932_v27  ;;  %v193_v32 = vsel %vm883_vm13, %v1177_v24, %v187_v45  ;;  %v202_v25 = vsel %vm887_vm14, %v1178_v62, %v196_v63  ;;  %v1179_v42 = vand.u32 2147483647, %v755_v15 }
  0x59   :  { %505 = vrsqrt.f32 %v935_v44  ;;  %v970_v21 = vadd.f32 %v1183_v57, %v1182_v41  ;;  %v974_v56 = vadd.f32 %v861_v37, %v1184_v1  ;;  %v978_v30 = vadd.f32 %v863_v50, %v1185_v51  ;;  %v1188_v50 = vld [vmem:[#allocation22_spill] sm:$0xff] }
  0x5a   :  { %vm963_vm15 = vcmp.lt.f32.partialorder %v1179_v42, 0.0004427343  ;;  %507 = vrsqrt.f32 %v940_v17  ;;  %v308_v15 = vmul.f32 %v869_v46, %v212_v55  ;;  %v982_v34 = vmul.f32 %v285_v60, %v213_v7  ;;  %v1189_v60 = vld [vmem:[#allocation14_spill] sm:$0xff] }
  0x5b   :  { %v984_v36 = vmul.f32 %v286_v38, %v214_v49  ;;  %v986_v52 = vmul.f32 %v287_v13, %v215_v43  ;;  %v211_v37 = vsel %vm963_vm15, %v1186_v48, %v949_v19  ;;  %v993_v54 = vadd.f32 %v193_v32, %v1187_v47 }
  0x5c   :  { %v996_v11 = vadd.f32 %v202_v25, %v1188_v50  ;;  %v998_v61 = vmul.f32 %v288_v20, %v216_v28  ;;  %vm318_vm0 = vcmp.eq.f32.partialorder %v895_v2, inf  ;;  %vm320_vm1 = vcmp.eq.f32.partialorder %v895_v2, 0.0 }
  0x5d   :  { %v321_v46 = vand.u32 2147483648, %v895_v2  ;;  %vm325_vm2 = vcmp.eq.f32.partialorder %v905_v26, inf  ;;  %vm327_vm3 = vcmp.eq.f32.partialorder %v905_v26, 0.0  ;;  %v328_v53 = vand.u32 2147483648, %v905_v26 }
  0x5e   :  { %v494_v3 = vpop.eup %493  ;;  %vm332_vm4 = vcmp.eq.f32.partialorder %v910_v23, inf  ;;  %vm334_vm5 = vcmp.eq.f32.partialorder %v910_v23, 0.0  ;;  %v335_v8 = vand.u32 2147483648, %v910_v23  ;;  %vm339_vm6 = vcmp.eq.f32.partialorder %v917_v31, inf }
  0x5f   :  { %v317_v4 = vmul.f32 %v494_v3, %v895_v2  ;;  %vm341_vm7 = vcmp.eq.f32.partialorder %v917_v31, 0.0  ;;  %v342_v5 = vand.u32 2147483648, %v917_v31  ;;  %vm346_vm8 = vcmp.eq.f32.partialorder %v924_v18, inf }
  0x60   :  { %vm348_vm9 = vcmp.eq.f32.partialorder %v924_v18, 0.0  ;;  %v349_v55 = vand.u32 2147483648, %v924_v18  ;;  %vm353_vm10 = vcmp.eq.f32.partialorder %v932_v27, inf  ;;  %v356_v14 = vand.u32 2147483648, %v932_v27 }
  0x61   :  { %v496_v12 = vpop.eup %495  ;;  %v319_v59 = vsel %vm318_vm0, %v895_v2, %v317_v4  ;;  %vm399_vm12 = vcmp.lt.s32.totalorder %v1189_v60, 2048  ;;  %vm400_vm13 = vcmp.lt.s32.totalorder %v1190_v9, 2048  ;;  %vm360_vm14 = vcmp.eq.f32.partialorder %v935_v44, inf  ;;  %v1193_v4 = vld [vmem:[#allocation23_spill] sm:$0xff] }
  0x62   :  { %v498_v10 = vpop.eup %497  ;;  %v322_v16 = vsel %vm320_vm1, %v321_v46, %v319_v59  ;;  %v324_v6 = vmul.f32 %v496_v12, %v905_v26  ;;  %vm362_vm0 = vcmp.eq.f32.partialorder %v935_v44, 0.0  ;;  %v363_v7 = vand.u32 2147483648, %v935_v44 }
  0x63   :  { %v500_v45 = vpop.eup %499  ;;  %v331_v63 = vmul.f32 %v498_v10, %v910_v23  ;;  %vm367_vm11 = vcmp.eq.f32.partialorder %v940_v17, inf  ;;  %v372_v49 = vmul.f32 %v322_v16, %v895_v2  ;;  %vm369_vm1 = vcmp.eq.f32.partialorder %v940_v17, 0.0 }
  0x64   :  { %v502_v43 = vpop.eup %501  ;;  %v326_v40 = vsel %vm325_vm2, %v905_v26, %v324_v6  ;;  %v338_v58 = vmul.f32 %v500_v45, %v917_v31  ;;  %v370_v38 = vand.u32 2147483648, %v940_v17  ;;  %vm1191_vm2 = vcmp.eq.f32.partialorder %v932_v27, 0.0  ;;  %v1199_v45 = vld [vmem:[#allocation13_spill] sm:$0xff] }
  0x65   :  { %v504_v22 = vpop.eup %503  ;;  %v329_v35 = vsel %vm327_vm3, %v328_v53, %v326_v40  ;;  %v333_v13 = vsel %vm332_vm4, %v910_v23, %v331_v63  ;;  %v345_v2 = vmul.f32 %v502_v43, %v924_v18  ;;  %v380_v33 = vmul.f32 %v372_v49, %v308_v15  ;;  %v1192_v53 = vld [vmem:[#allocation16_spill] sm:$0xff] }
  0x66   :  { %v506_v28 = vpop.eup %505  ;;  %v336_v39 = vsel %vm334_vm5, %v335_v8, %v333_v13  ;;  %v340_v29 = vsel %vm339_vm6, %v917_v31, %v338_v58  ;;  %v352_v20 = vmul.f32 %v504_v22, %v932_v27  ;;  %v373_v24 = vmul.f32 %v329_v35, %v905_v26 }
  0x67   :  { %v508_v32 = vpop.eup %507  ;;  %v343_v62 = vsel %vm341_vm7, %v342_v5, %v340_v29  ;;  %v347_v25 = vsel %vm346_vm8, %v924_v18, %v345_v2  ;;  %v359_v42 = vmul.f32 %v506_v28, %v935_v44  ;;  %v374_v41 = vmul.f32 %v336_v39, %v910_v23 }
  0x68   :  { %v350_v57 = vsel %vm348_vm9, %v349_v55, %v347_v25  ;;  %v354_v1 = vsel %vm353_vm10, %v932_v27, %v352_v20  ;;  %v366_v26 = vmul.f32 %v508_v32, %v940_v17  ;;  %v375_v51 = vmul.f32 %v343_v62, %v917_v31 }
  0x69   :  { %v357_v15 = vsel %vm1191_vm2, %v356_v14, %v354_v1  ;;  %v361_v47 = vsel %vm360_vm14, %v935_v44, %v359_v42  ;;  %v376_v23 = vmul.f32 %v350_v57, %v924_v18  ;;  %v381_v50 = vmul.f32 %v373_v24, %v982_v34  ;;  %v1198_v14 = vld [vmem:[#allocation18_spill] sm:$0xff] }
  0x6a   :  { %v364_v46 = vsel %vm362_vm0, %v363_v7, %v361_v47  ;;  %v368_v3 = vsel %vm367_vm11, %v940_v17, %v366_v26  ;;  %v382_v31 = vmul.f32 %v374_v41, %v984_v36  ;;  %vm401_vm3 = vcmp.lt.s32.totalorder %v1192_v53, 2048  ;;  %v1194_v36 = vld [vmem:[#allocation17_spill] sm:$0xff] }
  0x6b   :  { %v219_v18 = vadd.f32 %v211_v37, %v1193_v4  ;;  %v313_v34 = vmul.f32 %v970_v21, %v993_v54  ;;  %v377_v8 = vmul.f32 %v357_v15, %v932_v27  ;;  %v383_v5 = vmul.f32 %v375_v51, %v986_v52  ;;  %v1195_v52 = vld [vmem:[#allocation12_spill] sm:$0xff]  ;;  %v1197_v54 = vld [vmem:[#allocation11_spill] sm:$0xff] }
  0x6c   :  { %v371_v55 = vsel %vm369_vm1, %v370_v38, %v368_v3  ;;  %vm402_vm4 = vcmp.lt.s32.totalorder %v1194_v36, 2048  ;;  %v407_v12 = vsel %vm399_vm12, %v380_v33, 0.0  ;;  %v408_v0 = vsel %vm400_vm13, %v381_v50, 0.0 }
  0x6d   :  { %v314_v19 = vmul.f32 %v974_v56, %v996_v11  ;;  %v378_v21 = vmul.f32 %v364_v46, %v935_v44  ;;  %v384_v27 = vmul.f32 %v376_v23, %v998_v61  ;;  %v409_v48 = vsel %vm401_vm3, %v382_v31, 0.0  ;;  %v1201_v11 = vld [vmem:[#allocation19_spill] sm:$0xff] }
  0x6e   :  { %v1196_v37 = vmul.u32 128, %v1195_v52  ;;  %vm403_vm15 = vcmp.lt.s32.totalorder %v1198_v14, 2048  ;;  %v415_v10 = vadd.f32 %v408_v0, %v407_v12  ;;  %v315_v60 = vmul.f32 %v978_v30, %v219_v18 }
  0x6f   :  { %v379_v9 = vmul.f32 %v371_v55, %v940_v17  ;;  %v385_v16 = vmul.f32 %v377_v8, %v313_v34  ;;  %v410_v6 = vsel %vm402_vm4, %v383_v5, 0.0  ;;  %v1200_v56 = vmul.u32 128, %v1199_v45 }
  0x70   :  { %v66_v59 = vadd.s32 %v1197_v54, %v1196_v37  ;;  %vm404_vm5 = vcmp.lt.s32.totalorder %v1201_v11, 2048  ;;  %v416_v61 = vadd.f32 %v415_v10, %v409_v48  ;;  %v386_v63 = vmul.f32 %v378_v21, %v314_v19 }
  0x71   :  { %v67_v44 = vadd.s32 %v1197_v54, %v1200_v56  ;;  %v411_v7 = vsel %vm403_vm15, %v384_v27, 0.0  ;;  %v387_v43 = vmul.f32 %v379_v9, %v315_v60  ;;  %v412_v40 = vsel %vm404_vm5, %v385_v16, 0.0 }
  0x72   :  { %vm405_vm6 = vcmp.lt.s32.totalorder %v66_v59, 2048  ;;  %v417_v49 = vadd.f32 %v416_v61, %v410_v6 }
  0x73   :  { %vm406_vm7 = vcmp.lt.s32.totalorder %v67_v44, 2048  ;;  %v413_v30 = vsel %vm405_vm6, %v386_v63, 0.0 }
  0x74   :  { %v418_v58 = vadd.f32 %v417_v49, %v411_v7  ;;  %v414_v17 = vsel %vm406_vm7, %v387_v43, 0.0 }
  0x76   :  { %v419_v38 = vadd.f32 %v418_v58, %v412_v40 }
  0x78   :  { %v420_v22 = vadd.f32 %v419_v38, %v413_v30 }
  0x7a   :  { %v421_v35 = vadd.f32 %v420_v22, %v414_v17 }
  0x7c   :  { %423 = vst [vmem:[#allocation7] sm:$0xff] %v421_v35 }
  0x7d   :  { %560 = shalt.err (!%p557_p0)
}
  0x7e   :  { %433 = dma.vmem_to_hbm [thread:$0]  %s431_s1, 128, %s1116_s2, [#allocation4]  }
  0x7f   :  { %573 = dma.done.wait [#allocation4], 128  }
  0x80   :  { %574 = vsyncadd [#allocation4], 4294967168 }
  0x81   :  { %437 = vsyncpa [#allocation3], 1 }
  0x82   :  { %438 = vsyncpa [#allocation6], 1 }
  0x83   :  { %439 = vsyncpa [#allocation4], 1 }

</bundles_post_ra>
